<compile_context>
chip_gen: v7x
topology: tpu7x:2x2x1
jax: 0.10.0
libtpu: 0.0.40
codegen_flags: <defaults>
</compile_context>

<pallas_src>
import functools

import jax
import jax.numpy as jnp
from jax.experimental import pallas as pl
from jax.experimental.pallas import tpu as pltpu


def _gather_rows_kernel(idx_ref, emb_hbm, out_ref, sem, *, block_rows):
    """Gather `block_rows` embedding rows from HBM directly into the output tile.

    idx_ref : (N_pad,) int32 in SMEM (scalar prefetch) — flat token indices.
    emb_hbm : (V, E_pad) f32 ref left in HBM (memory_space=pl.ANY).
    out_ref : (block_rows, E_pad) f32 VMEM output tile for this grid step.
    sem     : (block_rows,) DMA completion semaphores.
    """
    base = pl.program_id(0) * block_rows
    copies = []
    # Start every row DMA first so all 1 KiB fetches are in flight concurrently
    # (they are pure HBM-latency bound), then wait on them once.
    for r in range(block_rows):          # static unrolled loop, block_rows small
        row = idx_ref[base + r]
        cp = pltpu.make_async_copy(
            emb_hbm.at[pl.ds(row, 1), :],   # (1, E_pad) source row in HBM
            out_ref.at[pl.ds(r, 1), :],     # (1, E_pad) slot in the output tile
            sem.at[r],
        )
        cp.start()
        copies.append(cp)
    for cp in copies:
        cp.wait()


def nnlm_forward(x_idx, emb_table, *, block_rows=8):
    """Embedding lookup + view, matching Model.forward up to its last statement."""
    B, S, W = x_idx.shape
    V, E = emb_table.shape

    N = B * S * W                              # total gathered rows
    steps = pl.cdiv(N, block_rows)             # row-blocked grid
    n_pad = steps * block_rows
    e_pad = ((E + 127) // 128) * 128           # lane-align embedding dim (169 -> 256)

    # Clamp indices (jnp.take semantics; nn.Embedding would raise) so the
    # data-dependent row DMA can never read out of bounds.  V is kept at the
    # module's true vocab size (169) — no rows are dropped.
    flat_idx = jnp.clip(x_idx.reshape(-1), 0, V - 1).astype(jnp.int32)
    flat_idx = jnp.pad(flat_idx, (0, n_pad - N))               # pad rows gather row 0
    emb_padded = jnp.pad(emb_table.astype(jnp.float32),
                         ((0, 0), (0, e_pad - E)))             # zero-pad lanes

    kernel = functools.partial(_gather_rows_kernel, block_rows=block_rows)

    out = pl.pallas_call(
        kernel,
        out_shape=jax.ShapeDtypeStruct((n_pad, e_pad), jnp.float32),
        grid_spec=pltpu.PrefetchScalarGridSpec(
            num_scalar_prefetch=1,               # flat_idx -> SMEM
            grid=(steps,),
            in_specs=[pl.BlockSpec(memory_space=pl.ANY)],      # table stays in HBM
            out_specs=pl.BlockSpec((block_rows, e_pad), lambda i, idx: (i, 0)),
            scratch_shapes=[pltpu.SemaphoreType.DMA((block_rows,))],
        ),
        compiler_params=pltpu.CompilerParams(
            dimension_semantics=("parallel",),   # row blocks independent (2-TC split on v7x)
        ),
        cost_estimate=pl.CostEstimate(
            flops=0,
            transcendentals=0,
            bytes_accessed=2 * n_pad * e_pad * 4,
        ),
    )(flat_idx, emb_padded)

    # Drop row/lane padding, then y = x.view(1, 5, win * emb) — metadata reshape.
    emb = out[:N, :E]
    y = emb.reshape(B, S, W * E)
    # TODO(synk): layer1/layer2/softmax exist in __init__ but are unused in the
    # reference forward (which also returns None); only the embedding+view path
    # is implemented.  If layer1 were used, its (W*E, V) GEMM would be fused
    # into the same body (jnp.dot on the gathered (TR, W*E) block) so the MXU
    # hides the row-gather DMA latency.
    return y


if __name__ == "__main__":
    # Shapes implied by the module: batch=1, seq=5, win=4, one-hot embedding
    # table, so embedding_size == voc_size == 169 (kept exactly; no rounding).
    batch_size, seq_size, win_size = 1, 5, 4
    voc_size = 169
    emb_size = voc_size

    key = jax.random.PRNGKey(0)
    x_idx = jax.random.randint(key, (batch_size, seq_size, win_size),
                               0, voc_size, dtype=jnp.int32)

    # nn.Embedding.from_pretrained(word_to_one_hot): one-hot table == identity.
    emb_table = jnp.eye(voc_size, emb_size, dtype=jnp.float32)

    y = nnlm_forward(x_idx, emb_table)
    y = jax.block_until_ready(y)

    # Reference check in plain JAX.
    ref = jnp.take(emb_table, x_idx.reshape(-1), axis=0).reshape(
        batch_size, seq_size, win_size * emb_size)
    assert y.shape == (batch_size, seq_size, win_size * emb_size), y.shape
    assert jnp.array_equal(y, ref), "mismatch vs reference embedding lookup"

    print("KERNEL_OK")
</pallas_src>

<mosaic_0001>
module attributes {stable_mosaic.version = 11 : i64} {
  func.func @_gather_rows_kernel(%arg0: i32, %arg1: memref<24xi32, #tpu.memory_space<smem>>, %arg2: memref<169x256xf32, #tpu.memory_space<any>>, %arg3: memref<8x256xf32, #tpu.memory_space<vmem>>, %arg4: memref<8x!tpu.dma_semaphore, #tpu.memory_space<semaphore_mem>>) attributes {dimension_semantics = [#tpu.dimension_semantics<parallel>], iteration_bounds = array<i64: 3>, scalar_prefetch = 1 : i64, scratch_operands = 1 : i64, tpu.core_type = #tpu.core_type<tc>, window_params = [{}, {transform_indices = @transform_1, window_bounds = array<i64: 8, 256>}]} {
    %c8_i32 = arith.constant 8 : i32
    %0 = arith.muli %arg0, %c8_i32 : i32
    %c0_i32 = arith.constant 0 : i32
    %1 = arith.addi %0, %c0_i32 : i32
    %2 = arith.index_cast %1 : i32 to index
    %3 = memref.load %arg1[%2] : memref<24xi32, #tpu.memory_space<smem>>
    %c0_i32_0 = arith.constant 0 : i32
    %c0_i32_1 = arith.constant 0 : i32
    %4 = tpu.memref_slice %arg2[%3, %c0_i32_1] : memref<169x256xf32, #tpu.memory_space<any>> -> memref<1x256xf32, #tpu.memory_space<any>>
    %c0_i32_2 = arith.constant 0 : i32
    %c0_i32_3 = arith.constant 0 : i32
    %5 = tpu.memref_slice %arg3[%c0_i32_2, %c0_i32_3] : memref<8x256xf32, #tpu.memory_space<vmem>> -> memref<1x256xf32, #tpu.memory_space<vmem>>
    %6 = tpu.memref_slice %arg4[%c0_i32_0] : memref<8x!tpu.dma_semaphore, #tpu.memory_space<semaphore_mem>> -> memref<1x!tpu.dma_semaphore, #tpu.memory_space<semaphore_mem>>
    %7 = tpu.memref_squeeze %6 : memref<1x!tpu.dma_semaphore, #tpu.memory_space<semaphore_mem>> -> memref<!tpu.dma_semaphore, #tpu.memory_space<semaphore_mem>>
    tpu.enqueue_dma source(%4 : memref<1x256xf32, #tpu.memory_space<any>>) target(%5 : memref<1x256xf32, #tpu.memory_space<vmem>>) target_semaphore(%7 : memref<!tpu.dma_semaphore, #tpu.memory_space<semaphore_mem>>)
    %c1_i32 = arith.constant 1 : i32
    %8 = arith.addi %0, %c1_i32 : i32
    %9 = arith.index_cast %8 : i32 to index
    %10 = memref.load %arg1[%9] : memref<24xi32, #tpu.memory_space<smem>>
    %c1_i32_4 = arith.constant 1 : i32
    %c0_i32_5 = arith.constant 0 : i32
    %11 = tpu.memref_slice %arg2[%10, %c0_i32_5] : memref<169x256xf32, #tpu.memory_space<any>> -> memref<1x256xf32, #tpu.memory_space<any>>
    %c1_i32_6 = arith.constant 1 : i32
    %c0_i32_7 = arith.constant 0 : i32
    %12 = tpu.memref_slice %arg3[%c1_i32_6, %c0_i32_7] : memref<8x256xf32, #tpu.memory_space<vmem>> -> memref<1x256xf32, #tpu.memory_space<vmem>>
    %13 = tpu.memref_slice %arg4[%c1_i32_4] : memref<8x!tpu.dma_semaphore, #tpu.memory_space<semaphore_mem>> -> memref<1x!tpu.dma_semaphore, #tpu.memory_space<semaphore_mem>>
    %14 = tpu.memref_squeeze %13 : memref<1x!tpu.dma_semaphore, #tpu.memory_space<semaphore_mem>> -> memref<!tpu.dma_semaphore, #tpu.memory_space<semaphore_mem>>
    tpu.enqueue_dma source(%11 : memref<1x256xf32, #tpu.memory_space<any>>) target(%12 : memref<1x256xf32, #tpu.memory_space<vmem>>) target_semaphore(%14 : memref<!tpu.dma_semaphore, #tpu.memory_space<semaphore_mem>>)
    %c2_i32 = arith.constant 2 : i32
    %15 = arith.addi %0, %c2_i32 : i32
    %16 = arith.index_cast %15 : i32 to index
    %17 = memref.load %arg1[%16] : memref<24xi32, #tpu.memory_space<smem>>
    %c2_i32_8 = arith.constant 2 : i32
    %c0_i32_9 = arith.constant 0 : i32
    %18 = tpu.memref_slice %arg2[%17, %c0_i32_9] : memref<169x256xf32, #tpu.memory_space<any>> -> memref<1x256xf32, #tpu.memory_space<any>>
    %c2_i32_10 = arith.constant 2 : i32
    %c0_i32_11 = arith.constant 0 : i32
    %19 = tpu.memref_slice %arg3[%c2_i32_10, %c0_i32_11] : memref<8x256xf32, #tpu.memory_space<vmem>> -> memref<1x256xf32, #tpu.memory_space<vmem>>
    %20 = tpu.memref_slice %arg4[%c2_i32_8] : memref<8x!tpu.dma_semaphore, #tpu.memory_space<semaphore_mem>> -> memref<1x!tpu.dma_semaphore, #tpu.memory_space<semaphore_mem>>
    %21 = tpu.memref_squeeze %20 : memref<1x!tpu.dma_semaphore, #tpu.memory_space<semaphore_mem>> -> memref<!tpu.dma_semaphore, #tpu.memory_space<semaphore_mem>>
    tpu.enqueue_dma source(%18 : memref<1x256xf32, #tpu.memory_space<any>>) target(%19 : memref<1x256xf32, #tpu.memory_space<vmem>>) target_semaphore(%21 : memref<!tpu.dma_semaphore, #tpu.memory_space<semaphore_mem>>)
    %c3_i32 = arith.constant 3 : i32
    %22 = arith.addi %0, %c3_i32 : i32
    %23 = arith.index_cast %22 : i32 to index
    %24 = memref.load %arg1[%23] : memref<24xi32, #tpu.memory_space<smem>>
    %c3_i32_12 = arith.constant 3 : i32
    %c0_i32_13 = arith.constant 0 : i32
    %25 = tpu.memref_slice %arg2[%24, %c0_i32_13] : memref<169x256xf32, #tpu.memory_space<any>> -> memref<1x256xf32, #tpu.memory_space<any>>
    %c3_i32_14 = arith.constant 3 : i32
    %c0_i32_15 = arith.constant 0 : i32
    %26 = tpu.memref_slice %arg3[%c3_i32_14, %c0_i32_15] : memref<8x256xf32, #tpu.memory_space<vmem>> -> memref<1x256xf32, #tpu.memory_space<vmem>>
    %27 = tpu.memref_slice %arg4[%c3_i32_12] : memref<8x!tpu.dma_semaphore, #tpu.memory_space<semaphore_mem>> -> memref<1x!tpu.dma_semaphore, #tpu.memory_space<semaphore_mem>>
    %28 = tpu.memref_squeeze %27 : memref<1x!tpu.dma_semaphore, #tpu.memory_space<semaphore_mem>> -> memref<!tpu.dma_semaphore, #tpu.memory_space<semaphore_mem>>
    tpu.enqueue_dma source(%25 : memref<1x256xf32, #tpu.memory_space<any>>) target(%26 : memref<1x256xf32, #tpu.memory_space<vmem>>) target_semaphore(%28 : memref<!tpu.dma_semaphore, #tpu.memory_space<semaphore_mem>>)
    %c4_i32 = arith.constant 4 : i32
    %29 = arith.addi %0, %c4_i32 : i32
    %30 = arith.index_cast %29 : i32 to index
    %31 = memref.load %arg1[%30] : memref<24xi32, #tpu.memory_space<smem>>
    %c4_i32_16 = arith.constant 4 : i32
    %c0_i32_17 = arith.constant 0 : i32
    %32 = tpu.memref_slice %arg2[%31, %c0_i32_17] : memref<169x256xf32, #tpu.memory_space<any>> -> memref<1x256xf32, #tpu.memory_space<any>>
    %c4_i32_18 = arith.constant 4 : i32
    %c0_i32_19 = arith.constant 0 : i32
    %33 = tpu.memref_slice %arg3[%c4_i32_18, %c0_i32_19] : memref<8x256xf32, #tpu.memory_space<vmem>> -> memref<1x256xf32, #tpu.memory_space<vmem>>
    %34 = tpu.memref_slice %arg4[%c4_i32_16] : memref<8x!tpu.dma_semaphore, #tpu.memory_space<semaphore_mem>> -> memref<1x!tpu.dma_semaphore, #tpu.memory_space<semaphore_mem>>
    %35 = tpu.memref_squeeze %34 : memref<1x!tpu.dma_semaphore, #tpu.memory_space<semaphore_mem>> -> memref<!tpu.dma_semaphore, #tpu.memory_space<semaphore_mem>>
    tpu.enqueue_dma source(%32 : memref<1x256xf32, #tpu.memory_space<any>>) target(%33 : memref<1x256xf32, #tpu.memory_space<vmem>>) target_semaphore(%35 : memref<!tpu.dma_semaphore, #tpu.memory_space<semaphore_mem>>)
    %c5_i32 = arith.constant 5 : i32
    %36 = arith.addi %0, %c5_i32 : i32
    %37 = arith.index_cast %36 : i32 to index
    %38 = memref.load %arg1[%37] : memref<24xi32, #tpu.memory_space<smem>>
    %c5_i32_20 = arith.constant 5 : i32
    %c0_i32_21 = arith.constant 0 : i32
    %39 = tpu.memref_slice %arg2[%38, %c0_i32_21] : memref<169x256xf32, #tpu.memory_space<any>> -> memref<1x256xf32, #tpu.memory_space<any>>
    %c5_i32_22 = arith.constant 5 : i32
    %c0_i32_23 = arith.constant 0 : i32
    %40 = tpu.memref_slice %arg3[%c5_i32_22, %c0_i32_23] : memref<8x256xf32, #tpu.memory_space<vmem>> -> memref<1x256xf32, #tpu.memory_space<vmem>>
    %41 = tpu.memref_slice %arg4[%c5_i32_20] : memref<8x!tpu.dma_semaphore, #tpu.memory_space<semaphore_mem>> -> memref<1x!tpu.dma_semaphore, #tpu.memory_space<semaphore_mem>>
    %42 = tpu.memref_squeeze %41 : memref<1x!tpu.dma_semaphore, #tpu.memory_space<semaphore_mem>> -> memref<!tpu.dma_semaphore, #tpu.memory_space<semaphore_mem>>
    tpu.enqueue_dma source(%39 : memref<1x256xf32, #tpu.memory_space<any>>) target(%40 : memref<1x256xf32, #tpu.memory_space<vmem>>) target_semaphore(%42 : memref<!tpu.dma_semaphore, #tpu.memory_space<semaphore_mem>>)
    %c6_i32 = arith.constant 6 : i32
    %43 = arith.addi %0, %c6_i32 : i32
    %44 = arith.index_cast %43 : i32 to index
    %45 = memref.load %arg1[%44] : memref<24xi32, #tpu.memory_space<smem>>
    %c6_i32_24 = arith.constant 6 : i32
    %c0_i32_25 = arith.constant 0 : i32
    %46 = tpu.memref_slice %arg2[%45, %c0_i32_25] : memref<169x256xf32, #tpu.memory_space<any>> -> memref<1x256xf32, #tpu.memory_space<any>>
    %c6_i32_26 = arith.constant 6 : i32
    %c0_i32_27 = arith.constant 0 : i32
    %47 = tpu.memref_slice %arg3[%c6_i32_26, %c0_i32_27] : memref<8x256xf32, #tpu.memory_space<vmem>> -> memref<1x256xf32, #tpu.memory_space<vmem>>
    %48 = tpu.memref_slice %arg4[%c6_i32_24] : memref<8x!tpu.dma_semaphore, #tpu.memory_space<semaphore_mem>> -> memref<1x!tpu.dma_semaphore, #tpu.memory_space<semaphore_mem>>
    %49 = tpu.memref_squeeze %48 : memref<1x!tpu.dma_semaphore, #tpu.memory_space<semaphore_mem>> -> memref<!tpu.dma_semaphore, #tpu.memory_space<semaphore_mem>>
    tpu.enqueue_dma source(%46 : memref<1x256xf32, #tpu.memory_space<any>>) target(%47 : memref<1x256xf32, #tpu.memory_space<vmem>>) target_semaphore(%49 : memref<!tpu.dma_semaphore, #tpu.memory_space<semaphore_mem>>)
    %c7_i32 = arith.constant 7 : i32
    %50 = arith.addi %0, %c7_i32 : i32
    %51 = arith.index_cast %50 : i32 to index
    %52 = memref.load %arg1[%51] : memref<24xi32, #tpu.memory_space<smem>>
    %c7_i32_28 = arith.constant 7 : i32
    %c0_i32_29 = arith.constant 0 : i32
    %53 = tpu.memref_slice %arg2[%52, %c0_i32_29] : memref<169x256xf32, #tpu.memory_space<any>> -> memref<1x256xf32, #tpu.memory_space<any>>
    %c7_i32_30 = arith.constant 7 : i32
    %c0_i32_31 = arith.constant 0 : i32
    %54 = tpu.memref_slice %arg3[%c7_i32_30, %c0_i32_31] : memref<8x256xf32, #tpu.memory_space<vmem>> -> memref<1x256xf32, #tpu.memory_space<vmem>>
    %55 = tpu.memref_slice %arg4[%c7_i32_28] : memref<8x!tpu.dma_semaphore, #tpu.memory_space<semaphore_mem>> -> memref<1x!tpu.dma_semaphore, #tpu.memory_space<semaphore_mem>>
    %56 = tpu.memref_squeeze %55 : memref<1x!tpu.dma_semaphore, #tpu.memory_space<semaphore_mem>> -> memref<!tpu.dma_semaphore, #tpu.memory_space<semaphore_mem>>
    tpu.enqueue_dma source(%53 : memref<1x256xf32, #tpu.memory_space<any>>) target(%54 : memref<1x256xf32, #tpu.memory_space<vmem>>) target_semaphore(%56 : memref<!tpu.dma_semaphore, #tpu.memory_space<semaphore_mem>>)
    %c0_i32_32 = arith.constant 0 : i32
    %c0_i32_33 = arith.constant 0 : i32
    %57 = tpu.memref_slice %arg2[%3, %c0_i32_33] : memref<169x256xf32, #tpu.memory_space<any>> -> memref<1x256xf32, #tpu.memory_space<any>>
    %c0_i32_34 = arith.constant 0 : i32
    %c0_i32_35 = arith.constant 0 : i32
    %58 = tpu.memref_slice %arg3[%c0_i32_34, %c0_i32_35] : memref<8x256xf32, #tpu.memory_space<vmem>> -> memref<1x256xf32, #tpu.memory_space<vmem>>
    %59 = tpu.memref_slice %arg4[%c0_i32_32] : memref<8x!tpu.dma_semaphore, #tpu.memory_space<semaphore_mem>> -> memref<1x!tpu.dma_semaphore, #tpu.memory_space<semaphore_mem>>
    %60 = tpu.memref_squeeze %59 : memref<1x!tpu.dma_semaphore, #tpu.memory_space<semaphore_mem>> -> memref<!tpu.dma_semaphore, #tpu.memory_space<semaphore_mem>>
    tpu.wait_dma2 semaphore(%60 : memref<!tpu.dma_semaphore, #tpu.memory_space<semaphore_mem>>) src(%57 : memref<1x256xf32, #tpu.memory_space<any>>) dst(%58 : memref<1x256xf32, #tpu.memory_space<vmem>>)
    %c1_i32_36 = arith.constant 1 : i32
    %c0_i32_37 = arith.constant 0 : i32
    %61 = tpu.memref_slice %arg2[%10, %c0_i32_37] : memref<169x256xf32, #tpu.memory_space<any>> -> memref<1x256xf32, #tpu.memory_space<any>>
    %c1_i32_38 = arith.constant 1 : i32
    %c0_i32_39 = arith.constant 0 : i32
    %62 = tpu.memref_slice %arg3[%c1_i32_38, %c0_i32_39] : memref<8x256xf32, #tpu.memory_space<vmem>> -> memref<1x256xf32, #tpu.memory_space<vmem>>
    %63 = tpu.memref_slice %arg4[%c1_i32_36] : memref<8x!tpu.dma_semaphore, #tpu.memory_space<semaphore_mem>> -> memref<1x!tpu.dma_semaphore, #tpu.memory_space<semaphore_mem>>
    %64 = tpu.memref_squeeze %63 : memref<1x!tpu.dma_semaphore, #tpu.memory_space<semaphore_mem>> -> memref<!tpu.dma_semaphore, #tpu.memory_space<semaphore_mem>>
    tpu.wait_dma2 semaphore(%64 : memref<!tpu.dma_semaphore, #tpu.memory_space<semaphore_mem>>) src(%61 : memref<1x256xf32, #tpu.memory_space<any>>) dst(%62 : memref<1x256xf32, #tpu.memory_space<vmem>>)
    %c2_i32_40 = arith.constant 2 : i32
    %c0_i32_41 = arith.constant 0 : i32
    %65 = tpu.memref_slice %arg2[%17, %c0_i32_41] : memref<169x256xf32, #tpu.memory_space<any>> -> memref<1x256xf32, #tpu.memory_space<any>>
    %c2_i32_42 = arith.constant 2 : i32
    %c0_i32_43 = arith.constant 0 : i32
    %66 = tpu.memref_slice %arg3[%c2_i32_42, %c0_i32_43] : memref<8x256xf32, #tpu.memory_space<vmem>> -> memref<1x256xf32, #tpu.memory_space<vmem>>
    %67 = tpu.memref_slice %arg4[%c2_i32_40] : memref<8x!tpu.dma_semaphore, #tpu.memory_space<semaphore_mem>> -> memref<1x!tpu.dma_semaphore, #tpu.memory_space<semaphore_mem>>
    %68 = tpu.memref_squeeze %67 : memref<1x!tpu.dma_semaphore, #tpu.memory_space<semaphore_mem>> -> memref<!tpu.dma_semaphore, #tpu.memory_space<semaphore_mem>>
    tpu.wait_dma2 semaphore(%68 : memref<!tpu.dma_semaphore, #tpu.memory_space<semaphore_mem>>) src(%65 : memref<1x256xf32, #tpu.memory_space<any>>) dst(%66 : memref<1x256xf32, #tpu.memory_space<vmem>>)
    %c3_i32_44 = arith.constant 3 : i32
    %c0_i32_45 = arith.constant 0 : i32
    %69 = tpu.memref_slice %arg2[%24, %c0_i32_45] : memref<169x256xf32, #tpu.memory_space<any>> -> memref<1x256xf32, #tpu.memory_space<any>>
    %c3_i32_46 = arith.constant 3 : i32
    %c0_i32_47 = arith.constant 0 : i32
    %70 = tpu.memref_slice %arg3[%c3_i32_46, %c0_i32_47] : memref<8x256xf32, #tpu.memory_space<vmem>> -> memref<1x256xf32, #tpu.memory_space<vmem>>
    %71 = tpu.memref_slice %arg4[%c3_i32_44] : memref<8x!tpu.dma_semaphore, #tpu.memory_space<semaphore_mem>> -> memref<1x!tpu.dma_semaphore, #tpu.memory_space<semaphore_mem>>
    %72 = tpu.memref_squeeze %71 : memref<1x!tpu.dma_semaphore, #tpu.memory_space<semaphore_mem>> -> memref<!tpu.dma_semaphore, #tpu.memory_space<semaphore_mem>>
    tpu.wait_dma2 semaphore(%72 : memref<!tpu.dma_semaphore, #tpu.memory_space<semaphore_mem>>) src(%69 : memref<1x256xf32, #tpu.memory_space<any>>) dst(%70 : memref<1x256xf32, #tpu.memory_space<vmem>>)
    %c4_i32_48 = arith.constant 4 : i32
    %c0_i32_49 = arith.constant 0 : i32
    %73 = tpu.memref_slice %arg2[%31, %c0_i32_49] : memref<169x256xf32, #tpu.memory_space<any>> -> memref<1x256xf32, #tpu.memory_space<any>>
    %c4_i32_50 = arith.constant 4 : i32
    %c0_i32_51 = arith.constant 0 : i32
    %74 = tpu.memref_slice %arg3[%c4_i32_50, %c0_i32_51] : memref<8x256xf32, #tpu.memory_space<vmem>> -> memref<1x256xf32, #tpu.memory_space<vmem>>
    %75 = tpu.memref_slice %arg4[%c4_i32_48] : memref<8x!tpu.dma_semaphore, #tpu.memory_space<semaphore_mem>> -> memref<1x!tpu.dma_semaphore, #tpu.memory_space<semaphore_mem>>
    %76 = tpu.memref_squeeze %75 : memref<1x!tpu.dma_semaphore, #tpu.memory_space<semaphore_mem>> -> memref<!tpu.dma_semaphore, #tpu.memory_space<semaphore_mem>>
    tpu.wait_dma2 semaphore(%76 : memref<!tpu.dma_semaphore, #tpu.memory_space<semaphore_mem>>) src(%73 : memref<1x256xf32, #tpu.memory_space<any>>) dst(%74 : memref<1x256xf32, #tpu.memory_space<vmem>>)
    %c5_i32_52 = arith.constant 5 : i32
    %c0_i32_53 = arith.constant 0 : i32
    %77 = tpu.memref_slice %arg2[%38, %c0_i32_53] : memref<169x256xf32, #tpu.memory_space<any>> -> memref<1x256xf32, #tpu.memory_space<any>>
    %c5_i32_54 = arith.constant 5 : i32
    %c0_i32_55 = arith.constant 0 : i32
    %78 = tpu.memref_slice %arg3[%c5_i32_54, %c0_i32_55] : memref<8x256xf32, #tpu.memory_space<vmem>> -> memref<1x256xf32, #tpu.memory_space<vmem>>
    %79 = tpu.memref_slice %arg4[%c5_i32_52] : memref<8x!tpu.dma_semaphore, #tpu.memory_space<semaphore_mem>> -> memref<1x!tpu.dma_semaphore, #tpu.memory_space<semaphore_mem>>
    %80 = tpu.memref_squeeze %79 : memref<1x!tpu.dma_semaphore, #tpu.memory_space<semaphore_mem>> -> memref<!tpu.dma_semaphore, #tpu.memory_space<semaphore_mem>>
    tpu.wait_dma2 semaphore(%80 : memref<!tpu.dma_semaphore, #tpu.memory_space<semaphore_mem>>) src(%77 : memref<1x256xf32, #tpu.memory_space<any>>) dst(%78 : memref<1x256xf32, #tpu.memory_space<vmem>>)
    %c6_i32_56 = arith.constant 6 : i32
    %c0_i32_57 = arith.constant 0 : i32
    %81 = tpu.memref_slice %arg2[%45, %c0_i32_57] : memref<169x256xf32, #tpu.memory_space<any>> -> memref<1x256xf32, #tpu.memory_space<any>>
    %c6_i32_58 = arith.constant 6 : i32
    %c0_i32_59 = arith.constant 0 : i32
    %82 = tpu.memref_slice %arg3[%c6_i32_58, %c0_i32_59] : memref<8x256xf32, #tpu.memory_space<vmem>> -> memref<1x256xf32, #tpu.memory_space<vmem>>
    %83 = tpu.memref_slice %arg4[%c6_i32_56] : memref<8x!tpu.dma_semaphore, #tpu.memory_space<semaphore_mem>> -> memref<1x!tpu.dma_semaphore, #tpu.memory_space<semaphore_mem>>
    %84 = tpu.memref_squeeze %83 : memref<1x!tpu.dma_semaphore, #tpu.memory_space<semaphore_mem>> -> memref<!tpu.dma_semaphore, #tpu.memory_space<semaphore_mem>>
    tpu.wait_dma2 semaphore(%84 : memref<!tpu.dma_semaphore, #tpu.memory_space<semaphore_mem>>) src(%81 : memref<1x256xf32, #tpu.memory_space<any>>) dst(%82 : memref<1x256xf32, #tpu.memory_space<vmem>>)
    %c7_i32_60 = arith.constant 7 : i32
    %c0_i32_61 = arith.constant 0 : i32
    %85 = tpu.memref_slice %arg2[%52, %c0_i32_61] : memref<169x256xf32, #tpu.memory_space<any>> -> memref<1x256xf32, #tpu.memory_space<any>>
    %c7_i32_62 = arith.constant 7 : i32
    %c0_i32_63 = arith.constant 0 : i32
    %86 = tpu.memref_slice %arg3[%c7_i32_62, %c0_i32_63] : memref<8x256xf32, #tpu.memory_space<vmem>> -> memref<1x256xf32, #tpu.memory_space<vmem>>
    %87 = tpu.memref_slice %arg4[%c7_i32_60] : memref<8x!tpu.dma_semaphore, #tpu.memory_space<semaphore_mem>> -> memref<1x!tpu.dma_semaphore, #tpu.memory_space<semaphore_mem>>
    %88 = tpu.memref_squeeze %87 : memref<1x!tpu.dma_semaphore, #tpu.memory_space<semaphore_mem>> -> memref<!tpu.dma_semaphore, #tpu.memory_space<semaphore_mem>>
    tpu.wait_dma2 semaphore(%88 : memref<!tpu.dma_semaphore, #tpu.memory_space<semaphore_mem>>) src(%85 : memref<1x256xf32, #tpu.memory_space<any>>) dst(%86 : memref<1x256xf32, #tpu.memory_space<vmem>>)
    return
  }
  func.func @transform_1(%arg0: i32, %arg1: memref<24xi32, #tpu.memory_space<smem>>) -> (i32, i32) {
    %c0_i32 = arith.constant 0 : i32
    %c0_i32_0 = arith.constant 0 : i32
    return %arg0, %c0_i32 : i32, i32
  }
}

</mosaic_0001>

<bundles_post_ra>
// kernel: tpu_custom_call.1
= control target key start
LH: loop header
LB: loop body
LE: loop exit
PB: predicated region body
PF: predicated region fallthrough
CT: control target
= control target key end

     0   :  { %s1214_s0 = inlined_call_operand.hbm [shape: s32[24], index: 0, kind: input, shape index: {}]   ;;  %s1215_s1 = inlined_call_operand.hbm [shape: f32[169,256], index: 1, kind: input, shape index: {}]   ;;  %s1216_s2 = inlined_call_operand.hbm [shape: f32[24,256], index: 2, kind: output, shape index: {}]  }
   0x1   :  { %1233 = sst [smem:[#allocation39_spill]] %s1216_s2  ;;  %s438_s11 = scalar_lea.hbm %s1214_s0, 16 }
   0x2   :  { %p439_p0 = scmp.ne.s32.totalorder %s1214_s0, %s438_s11  ;;  %p442_p1 = scmp.lt.u32.totalorder %s438_s11, %s1214_s0 }
   0x4   :  { %p444_p2 = pnand %p442_p1, %p439_p0 }
   0x6   :  { %447 = shalt.err (!%p444_p2)  }
   0x7   :  { %s764_s16 = smov [#allocation4]  }
   0x8   :  { %8 = dma.hbm_to_smem %s1214_s0, 16, %s764_s16, [#allocation3] }
   0x9   :  { %714 = dma.done.wait [#allocation3], 16 }
   0xa   :  { %715 = vsyncadd [#allocation3], 4294967280 }
   0xb   :  { %10 = sfence }
   0xc   :  { %11 = vsyncpa [#allocation6], 0 }
   0xd   :  { %13 = vsyncpa [#allocation6 + $0x1], 0  ;;  %s795_s19 = smov 0   ;;  %s797_s20 = smov 0  }
   0xe   :  { %s799_s21 = smov 0  }
   0xf LB: > { %1234 = sst [smem:[#allocation33_spill]] %s754_s19  ;;  %s332_s0 = sadd.s32 4294967295, %s762_s21   ;;  %s762_s21 = sphi %s799_s21, %s1257_s21   ;;  %s758_s20 = sphi %s797_s20, %s1258_s20   ;;  %s754_s19 = sphi %s795_s19, %s1246_s19  }
  0x10   : > { %1235 = sst [smem:[#allocation34_spill]] %s758_s20  ;;  %s812_s22 = sadd.s32 1, %s762_s21  }
  0x11   : > { %1236 = sst [smem:[#allocation35_spill]] %s812_s22  ;;  %s22_s23 = ssub.s32 %s762_s21, %s812_s22 }
  0x12   : > { %s25_s24 = sadd.s32 1, %s758_s20  ;;  %p23_p3 = scmp.eq.s32.totalorder %s22_s23, 0 }
  0x13   : > { %p333_p4 = scmp.ne.s32.totalorder %s22_s23, 0  ;;  %p29_p5 = scmp.eq.s32.totalorder %s762_s21, 2 }
  0x14   : > { %p34_p6 = scmp.ne.s32.totalorder %s758_s20, %s754_s19  ;;  %p35_p8 = scmp.eq.s32.totalorder %s332_s0, 2 }
  0x15   : > { %s821_s25 = scalar_select %p23_p3, %s758_s20, %s25_s24  }
  0x16   : > { %p823_p7 = por %p333_p4, %p29_p5  ;;  %p409_p9 = scmp.lt.s32.totalorder %s762_s21, 3 }
  0x17   : > { %1237 = sst [smem:[#allocation36_spill]] %s821_s25  ;;  %p828_p10 = por %p35_p8, %p34_p6 }
  0x18   : > { %s1238_s26 = scalar_select %p823_p7, 1, 0 }
  0x19   : > { %s1239_s27 = scalar_select %p828_p10, 1, 0 }
  0x1a   : > { %s1217_s28 = sand.u32 1, %s758_s20   ;;  %s836_s30 = sshll.u32 %s762_s21, 3 }
  0x1b   : > { %1240 = sst [smem:[#allocation37_spill]] %s1239_s27  ;;  %s335_s29 = sshll.u32 %s1217_s28, 4 }
  0x1c   : > { %s370_s3 = scalar_select %p409_p9, [#allocation4], [#allocation15] }
  0x1d   : > { %s371_s4 = scalar_select %p409_p9, %s836_s30, 0 }
  0x1e   : > { %s843_s5 = scalar_lea.vmem [#allocation5], %s335_s29  ;;  %s65_s8 = sadd.s32 1, %s836_s30 }
  0x1f   : > { %s61_s6 = sshll.u32 %s843_s5, 4  ;;  %s53_s7 = sld [smem:[%s370_s3 + %s371_s4]]  ;;  %s852_s6 = int_to_ptr.vmem [resolvable:$true] %s61_s6 }
  0x20   : > { %s73_s9 = scalar_lea.vmem %s843_s5, 1 [#allocation5]  ;;  %s1260_s8 = smov (!%p409_p9, %s65_s8), 0 }
  0x21   : > { %s373_s10 = scalar_select %p409_p9, [#allocation4], [#allocation16] }
  0x22   : > { %1241 = sst [smem:[#allocation38_spill]] %s852_s6  ;;  %s76_s11 = sshll.u32 %s73_s9, 4  ;;  %s858_s11 = int_to_ptr.vmem [resolvable:$true] %s76_s11 }
  0x23   : > { %s854_s12 = sld [smem:[%s373_s10 + %s1260_s8]]  ;;  %s88_s17 = scalar_lea.vmem %s843_s5, 2 [#allocation5] }
  0x24   : > { %s91_s0 = sshll.u32 %s88_s17, 4  ;;  %s874_s9 = scalar_lea.hbm %s1215_s1, 5632  ;;  %s865_s0 = int_to_ptr.vmem [resolvable:$true] %s91_s0 }
  0x25   : > { %s54_s14 = sshrl.u32 %s53_s7, 3  ;;  %s55_s15 = sand.u32 7, %s53_s7  }
  0x26   : > { %s337_s16 = sshll.u32 %s54_s14, 4 }
  0x27   : > { %s57_s18 = sadd.s32 %s337_s16, %s55_s15 }
  0x28   : > { %s338_s23 = sshll.u32 %s57_s18, 4 }
  0x29   : > { %s863_s3 = scalar_lea.hbm %s1215_s1, %s338_s23 }
  0x2a   : > { %s448_s4 = scalar_lea.hbm %s863_s3, 32  ;;  %p453_p0 = scmp.lt.u32.totalorder %s863_s3, %s1215_s1 }
  0x2b   : > { %p449_p11 = scmp.ne.s32.totalorder %s863_s3, %s448_s4  ;;  %p454_p1 = scmp.lt.u32.totalorder %s874_s9, %s448_s4 }
  0x2c   : > { %p456_p3 = scmp.lt.u32.totalorder %s448_s4, %s863_s3 }
  0x2d   : > { %p450_p12 = pnand %p449_p11, %p409_p9  ;;  %p455_p2 = por %p454_p1, %p453_p0 }
  0x2f   : > { %p451_p13 = pneg %p450_p12  ;;  %p457_p4 = por %p456_p3, %p455_p2 }
  0x31   : > { %p458_p5 = pnand %p457_p4, %p451_p13 }
  0x33   : > { %461 = shalt.err (!%p458_p5)  }
  0x34   : > { %s462_s15 = scalar_lea.vmem %s852_s6, 32  ;;  %s765_s16 = smov [#allocation5]  }
  0x35   : > { %p463_p6 = scmp.ne.s32.totalorder %s852_s6, %s462_s15  ;;  %s466_s17 = sshll.u32 %s765_s16, 4  ;;  %s886_s17 = int_to_ptr.vmem [resolvable:$false] %s466_s17 }
  0x36   : > { %s889_s18 = scalar_lea.vmem %s886_s17, 512  ;;  %p1223_p12 = scmp.lt.s32.totalorder %s852_s6, %s886_s17 }
  0x37   : > { %p464_p8 = pnand %p463_p6, %p409_p9  ;;  %p470_p13 = scmp.lt.s32.totalorder %s889_s18, %s462_s15 }
  0x39   : > { %p465_p11 = pneg %p464_p8  ;;  %p471_p0 = por %p470_p13, %p1223_p12 }
  0x3b   : > { %p472_p1 = pnand %p471_p0, %p465_p11 }
  0x3d   : > { %475 = shalt.err (!%p472_p1)  }
  0x3e   : > { %s1221_s23 = smov 128   ;;  %s1224_s24 = smov 1  }
  0x3f   : > { %372 = dma.hbm_to_vmem [thread:$0]  (%p409_p9), %s863_s3, 32, %s852_s6, [#allocation2], %s1221_s23, %s1221_s23, %s1224_s24 }
  0x40   : > { %s67_s29 = sshrl.u32 %s854_s12, 3  ;;  %s68_s4 = sand.u32 7, %s854_s12  }
  0x41   : > { %s339_s7 = sshll.u32 %s67_s29, 4  ;;  %s103_s8 = scalar_lea.vmem %s843_s5, 3 [#allocation5] }
  0x42   : > { %s70_s10 = sadd.s32 %s339_s7, %s68_s4  ;;  %s95_s14 = sadd.s32 3, %s836_s30 }
  0x43   : > { %s340_s15 = sshll.u32 %s70_s10, 4  ;;  %s908_s16 = sshll.u32 %s103_s8, 4  ;;  %s955_s16 = int_to_ptr.vmem [resolvable:$true] %s908_s16 }
  0x44   : > { %s72_s25 = scalar_lea.hbm %s1215_s1, %s340_s15  ;;  %s110_s22 = sadd.s32 4, %s836_s30 }
  0x45   : > { %s476_s27 = scalar_lea.hbm %s72_s25, 32  ;;  %p481_p5 = scmp.lt.u32.totalorder %s72_s25, %s1215_s1 }
  0x46   : > { %p477_p2 = scmp.ne.s32.totalorder %s72_s25, %s476_s27  ;;  %p482_p6 = scmp.lt.u32.totalorder %s874_s9, %s476_s27 }
  0x47   : > { %p484_p11 = scmp.lt.u32.totalorder %s476_s27, %s72_s25 }
  0x48   : > { %p478_p3 = pnand %p477_p2, %p409_p9  ;;  %p483_p8 = por %p482_p6, %p481_p5 }
  0x4a   : > { %p479_p4 = pneg %p478_p3  ;;  %p485_p13 = por %p484_p11, %p483_p8 }
  0x4c   : > { %p486_p0 = pnand %p485_p13, %p479_p4 }
  0x4e   : > { %489 = shalt.err (!%p486_p0)  }
  0x4f   : > { %s490_s28 = scalar_lea.vmem %s858_s11, 32  ;;  %p497_p12 = scmp.lt.s32.totalorder %s858_s11, %s886_s17 }
  0x50   : > { %p491_p1 = scmp.ne.s32.totalorder %s858_s11, %s490_s28  ;;  %p498_p10 = scmp.lt.s32.totalorder %s889_s18, %s490_s28 }
  0x52   : > { %p492_p2 = pnand %p491_p1, %p409_p9  ;;  %p499_p7 = por %p498_p10, %p497_p12 }
  0x54   : > { %p493_p3 = pneg %p492_p2 }
  0x56   : > { %p500_p5 = pnand %p499_p7, %p493_p3 }
  0x58   : > { %503 = shalt.err (!%p500_p5)  }
  0x59   : > { %s1242_s27 = smov 128   ;;  %s1243_s13 = sadd.s32 2, %s836_s30 }
  0x5a   : > { %375 = dma.hbm_to_vmem [thread:$0]  (%p409_p9), %s72_s25, 32, %s858_s11, [#allocation2 + $0x1], %s1242_s27, %s1242_s27, %s1224_s24 }
  0x5b   : > { %s376_s12 = scalar_select %p409_p9, [#allocation4], [#allocation17] }
  0x5c   : > { %s1262_s13 = smov (!%p409_p9, %s1243_s13), 0  ;;  %s118_s4 = scalar_lea.vmem %s843_s5, 4 [#allocation5] }
  0x5d   : > { %s379_s23 = scalar_select %p409_p9, [#allocation4], [#allocation18] }
  0x5e   : > { %s81_s29 = sld [smem:[%s376_s12 + %s1262_s13]]  ;;  %s1264_s14 = smov (!%p409_p9, %s95_s14), 0 }
  0x5f   : > { %s382_s7 = scalar_select %p409_p9, [#allocation4], [#allocation19] }
  0x60   : > { %s948_s8 = sld [smem:[%s379_s23 + %s1264_s14]]  ;;  %s121_s25 = sshll.u32 %s118_s4, 4  ;;  %s957_s25 = int_to_ptr.vmem [resolvable:$true] %s121_s25 }
  0x61   : > { %s1266_s22 = smov (!%p409_p9, %s110_s22), 0  ;;  %s125_s14 = sadd.s32 5, %s836_s30 }
  0x62   : > { %s959_s3 = sld [smem:[%s382_s7 + %s1266_s22]] }
  0x64   : > { %s82_s11 = sshrl.u32 %s81_s29, 3  ;;  %s83_s10 = sand.u32 7, %s81_s29  }
  0x65   : > { %s341_s15 = sshll.u32 %s82_s11, 4 }
  0x66   : > { %s85_s28 = sadd.s32 %s341_s15, %s83_s10  ;;  %s97_s13 = sshrl.u32 %s948_s8, 3 }
  0x67   : > { %s342_s12 = sshll.u32 %s85_s28, 4  ;;  %s98_s2 = sand.u32 7, %s948_s8  }
  0x68   : > { %s87_s24 = scalar_lea.hbm %s1215_s1, %s342_s12 }
  0x69   : > { %s504_s6 = scalar_lea.hbm %s87_s24, 32  ;;  %p509_p4 = scmp.lt.u32.totalorder %s87_s24, %s1215_s1 }
  0x6a   : > { %p505_p7 = scmp.ne.s32.totalorder %s87_s24, %s504_s6  ;;  %p510_p6 = scmp.lt.u32.totalorder %s874_s9, %s504_s6 }
  0x6b   : > { %p512_p11 = scmp.lt.u32.totalorder %s504_s6, %s87_s24 }
  0x6c   : > { %p506_p10 = pnand %p505_p7, %p409_p9  ;;  %p511_p8 = por %p510_p6, %p509_p4 }
  0x6e   : > { %p507_p12 = pneg %p506_p10  ;;  %p513_p13 = por %p512_p11, %p511_p8 }
  0x70   : > { %p514_p0 = pnand %p513_p13, %p507_p12 }
  0x72   : > { %517 = shalt.err (!%p514_p0)  }
  0x73   : > { %s518_s22 = scalar_lea.vmem %s865_s0, 32  ;;  %p525_p5 = scmp.lt.s32.totalorder %s865_s0, %s886_s17 }
  0x74   : > { %p519_p1 = scmp.ne.s32.totalorder %s865_s0, %s518_s22  ;;  %p526_p7 = scmp.lt.s32.totalorder %s889_s18, %s518_s22 }
  0x76   : > { %p520_p2 = pnand %p519_p1, %p409_p9  ;;  %p527_p10 = por %p526_p7, %p525_p5 }
  0x78   : > { %p521_p3 = pneg %p520_p2 }
  0x7a   : > { %p528_p4 = pnand %p527_p10, %p521_p3 }
  0x7c   : > { %531 = shalt.err (!%p528_p4)  }
  0x7d   : > { %s1244_s19 = smov 1   ;;  %s343_s20 = sshll.u32 %s97_s13, 4 }
  0x7e   : > { %378 = dma.hbm_to_vmem [thread:$0]  (%p409_p9), %s87_s24, 32, %s865_s0, [#allocation2 + $0x2], %s1242_s27, %s1242_s27, %s1244_s19 }
  0x7f   : > { %s133_s6 = scalar_lea.vmem %s843_s5, 5 [#allocation5]  ;;  %s100_s29 = sadd.s32 %s343_s20, %s98_s2 }
  0x80   : > { %s112_s7 = sshrl.u32 %s959_s3, 3  ;;  %s344_s8 = sshll.u32 %s100_s29, 4 }
  0x81   : > { %s113_s11 = sand.u32 7, %s959_s3   ;;  %s102_s28 = scalar_lea.hbm %s1215_s1, %s344_s8 }
  0x82   : > { %s345_s12 = sshll.u32 %s112_s7, 4  ;;  %s532_s23 = scalar_lea.hbm %s102_s28, 32 }
  0x83   : > { %p533_p12 = scmp.ne.s32.totalorder %s102_s28, %s532_s23  ;;  %p537_p11 = scmp.lt.u32.totalorder %s102_s28, %s1215_s1 }
  0x84   : > { %p538_p13 = scmp.lt.u32.totalorder %s874_s9, %s532_s23  ;;  %p540_p1 = scmp.lt.u32.totalorder %s532_s23, %s102_s28 }
  0x85   : > { %p534_p6 = pnand %p533_p12, %p409_p9 }
  0x86   : > { %p539_p0 = por %p538_p13, %p537_p11 }
  0x87   : > { %p535_p8 = pneg %p534_p6 }
  0x88   : > { %p541_p2 = por %p540_p1, %p539_p0 }
  0x8a   : > { %p542_p3 = pnand %p541_p2, %p535_p8 }
  0x8c   : > { %545 = shalt.err (!%p542_p3)  }
  0x8d   : > { %s546_s2 = scalar_lea.vmem %s955_s16, 32  ;;  %p553_p4 = scmp.lt.s32.totalorder %s955_s16, %s886_s17 }
  0x8e   : > { %p547_p5 = scmp.ne.s32.totalorder %s955_s16, %s546_s2  ;;  %p554_p12 = scmp.lt.s32.totalorder %s889_s18, %s546_s2 }
  0x90   : > { %p548_p7 = pnand %p547_p5, %p409_p9  ;;  %p555_p6 = por %p554_p12, %p553_p4 }
  0x92   : > { %p549_p10 = pneg %p548_p7 }
  0x94   : > { %p556_p11 = pnand %p555_p6, %p549_p10 }
  0x96   : > { %559 = shalt.err (!%p556_p11)  }
  0x97   : > { %381 = dma.hbm_to_vmem [thread:$0]  (%p409_p9), %s102_s28, 32, %s955_s16, [#allocation2 + $0x3], %s1242_s27, %s1242_s27, %s1244_s19 }
  0x98   : > { %s115_s0 = sadd.s32 %s345_s12, %s113_s11  ;;  %s1013_s24 = sshll.u32 %s133_s6, 4  ;;  %s1050_s24 = int_to_ptr.vmem [resolvable:$true] %s1013_s24 }
  0x99   : > { %s346_s3 = sshll.u32 %s115_s0, 4  ;;  %s140_s13 = sadd.s32 6, %s836_s30 }
  0x9a   : > { %s117_s7 = scalar_lea.hbm %s1215_s1, %s346_s3  ;;  %s148_s8 = scalar_lea.vmem %s843_s5, 6 [#allocation5] }
  0x9b   : > { %s560_s10 = scalar_lea.hbm %s117_s7, 32  ;;  %p565_p1 = scmp.lt.u32.totalorder %s117_s7, %s1215_s1 }
  0x9c   : > { %p561_p8 = scmp.ne.s32.totalorder %s117_s7, %s560_s10  ;;  %p566_p2 = scmp.lt.u32.totalorder %s874_s9, %s560_s10 }
  0x9d   : > { %p568_p5 = scmp.lt.u32.totalorder %s560_s10, %s117_s7 }
  0x9e   : > { %p562_p13 = pnand %p561_p8, %p409_p9  ;;  %p567_p3 = por %p566_p2, %p565_p1 }
  0xa0   : > { %p563_p0 = pneg %p562_p13  ;;  %p569_p7 = por %p568_p5, %p567_p3 }
  0xa2   : > { %p570_p10 = pnand %p569_p7, %p563_p0 }
  0xa4   : > { %573 = shalt.err (!%p570_p10)  }
  0xa5   : > { %s574_s16 = scalar_lea.vmem %s957_s25, 32  ;;  %p581_p11 = scmp.lt.s32.totalorder %s957_s25, %s886_s17 }
  0xa6   : > { %p575_p4 = scmp.ne.s32.totalorder %s957_s25, %s574_s16  ;;  %p582_p8 = scmp.lt.s32.totalorder %s889_s18, %s574_s16 }
  0xa8   : > { %p576_p12 = pnand %p575_p4, %p409_p9  ;;  %p583_p13 = por %p582_p8, %p581_p11 }
  0xaa   : > { %p577_p6 = pneg %p576_p12 }
  0xac   : > { %p584_p1 = pnand %p583_p13, %p577_p6 }
  0xae   : > { %587 = shalt.err (!%p584_p1)  }
  0xaf   : > { %384 = dma.hbm_to_vmem [thread:$0]  (%p409_p9), %s117_s7, 32, %s957_s25, [#allocation2 + $0x4], %s1242_s27, %s1242_s27, %s1244_s19 }
  0xb0   : > { %s385_s6 = scalar_select %p409_p9, [#allocation4], [#allocation20] }
  0xb1   : > { %s1268_s14 = smov (!%p409_p9, %s125_s14), 0  ;;  %s151_s12 = sshll.u32 %s148_s8, 4  ;;  %s1055_s12 = int_to_ptr.vmem [resolvable:$true] %s151_s12 }
  0xb2   : > { %s388_s11 = scalar_select %p409_p9, [#allocation4], [#allocation21] }
  0xb3   : > { %s126_s28 = sld [smem:[%s385_s6 + %s1268_s14]]  ;;  %s1270_s13 = smov (!%p409_p9, %s140_s13), 0 }
  0xb4   : > { %s155_s4 = sadd.s32 7, %s836_s30  ;;  %s1053_s22 = sld [smem:[%s388_s11 + %s1270_s13]] }
  0xb5   : > { %s391_s25 = scalar_select %p409_p9, [#allocation4], [#allocation22] }
  0xb6   : > { %s1272_s4 = smov (!%p409_p9, %s155_s4), 0  ;;  %s163_s29 = scalar_lea.vmem %s843_s5, 7 [#allocation5] }
  0xb7   : > { %s1061_s3 = sld [smem:[%s391_s25 + %s1272_s4]] }
  0xb9   : > { %s127_s2 = sshrl.u32 %s126_s28, 3  ;;  %s128_s14 = sand.u32 7, %s126_s28  }
  0xba   : > { %s347_s0 = sshll.u32 %s127_s2, 4  ;;  %s142_s13 = sshrl.u32 %s1053_s22, 3 }
  0xbb   : > { %s130_s20 = sadd.s32 %s347_s0, %s128_s14  ;;  %s143_s15 = sand.u32 7, %s1053_s22  }
  0xbc   : > { %s348_s30 = sshll.u32 %s130_s20, 4 }
  0xbd   : > { %s132_s10 = scalar_lea.hbm %s1215_s1, %s348_s30 }
  0xbe   : > { %s588_s23 = scalar_lea.hbm %s132_s10, 32  ;;  %p593_p5 = scmp.lt.u32.totalorder %s132_s10, %s1215_s1 }
  0xbf   : > { %p589_p0 = scmp.ne.s32.totalorder %s132_s10, %s588_s23  ;;  %p594_p7 = scmp.lt.u32.totalorder %s874_s9, %s588_s23 }
  0xc0   : > { %p596_p4 = scmp.lt.u32.totalorder %s588_s23, %s132_s10 }
  0xc1   : > { %p590_p2 = pnand %p589_p0, %p409_p9  ;;  %p595_p10 = por %p594_p7, %p593_p5 }
  0xc3   : > { %p591_p3 = pneg %p590_p2  ;;  %p597_p12 = por %p596_p4, %p595_p10 }
  0xc5   : > { %p598_p6 = pnand %p597_p12, %p591_p3 }
  0xc7   : > { %601 = shalt.err (!%p598_p6)  }
  0xc8   : > { %s602_s11 = scalar_lea.vmem %s1050_s24, 32  ;;  %p609_p1 = scmp.lt.s32.totalorder %s1050_s24, %s886_s17 }
  0xc9   : > { %p603_p11 = scmp.ne.s32.totalorder %s1050_s24, %s602_s11  ;;  %p610_p0 = scmp.lt.s32.totalorder %s889_s18, %s602_s11 }
  0xcb   : > { %p604_p8 = pnand %p603_p11, %p409_p9  ;;  %p611_p2 = por %p610_p0, %p609_p1 }
  0xcd   : > { %p605_p13 = pneg %p604_p8 }
  0xcf   : > { %p612_p5 = pnand %p611_p2, %p605_p13 }
  0xd1   : > { %615 = shalt.err (!%p612_p5)  }
  0xd2   : > { %387 = dma.hbm_to_vmem [thread:$0]  (%p409_p9), %s132_s10, 32, %s1050_s24, [#allocation2 + $0x5], %s1242_s27, %s1242_s27, %s1244_s19 }
  0xd3   : > { %s349_s28 = sshll.u32 %s142_s13, 4  ;;  %s1090_s4 = sshll.u32 %s163_s29, 4  ;;  %s167_s4 = int_to_ptr.vmem [resolvable:$true] %s1090_s4 }
  0xd4   : > { %s145_s22 = sadd.s32 %s349_s28, %s143_s15  ;;  %s157_s25 = sshrl.u32 %s1061_s3, 3 }
  0xd5   : > { %s350_s2 = sshll.u32 %s145_s22, 4  ;;  %s158_s14 = sand.u32 7, %s1061_s3  }
  0xd6   : > { %s147_s30 = scalar_lea.hbm %s1215_s1, %s350_s2  ;;  %s351_s7 = sshll.u32 %s157_s25, 4 }
  0xd7   : > { %s616_s8 = scalar_lea.hbm %s147_s30, 32  ;;  %p621_p4 = scmp.lt.u32.totalorder %s147_s30, %s1215_s1 }
  0xd8   : > { %p617_p3 = scmp.ne.s32.totalorder %s147_s30, %s616_s8  ;;  %p622_p12 = scmp.lt.u32.totalorder %s874_s9, %s616_s8 }
  0xd9   : > { %p624_p11 = scmp.lt.u32.totalorder %s616_s8, %s147_s30 }
  0xda   : > { %p618_p7 = pnand %p617_p3, %p409_p9  ;;  %p623_p6 = por %p622_p12, %p621_p4 }
  0xdc   : > { %p619_p10 = pneg %p618_p7  ;;  %p625_p8 = por %p624_p11, %p623_p6 }
  0xde   : > { %p626_p13 = pnand %p625_p8, %p619_p10 }
  0xe0   : > { %629 = shalt.err (!%p626_p13)  }
  0xe1   : > { %s630_s5 = scalar_lea.vmem %s1055_s12, 32  ;;  %p637_p5 = scmp.lt.s32.totalorder %s1055_s12, %s886_s17 }
  0xe2   : > { %p631_p1 = scmp.ne.s32.totalorder %s1055_s12, %s630_s5  ;;  %p638_p3 = scmp.lt.s32.totalorder %s889_s18, %s630_s5 }
  0xe4   : > { %p632_p0 = pnand %p631_p1, %p409_p9  ;;  %p639_p7 = por %p638_p3, %p637_p5 }
  0xe6   : > { %p633_p2 = pneg %p632_p0 }
  0xe8   : > { %p640_p4 = pnand %p639_p7, %p633_p2 }
  0xea   : > { %643 = shalt.err (!%p640_p4)  }
  0xeb   : > { %390 = dma.hbm_to_vmem [thread:$0]  (%p409_p9), %s147_s30, 32, %s1055_s12, [#allocation2 + $0x6], %s1242_s27, %s1242_s27, %s1244_s19 }
  0xec   : > { %s160_s3 = sadd.s32 %s351_s7, %s158_s14 }
  0xed   : > { %s352_s29 = sshll.u32 %s160_s3, 4 }
  0xee   : > { %s162_s15 = scalar_lea.hbm %s1215_s1, %s352_s29 }
  0xef   : > { %s644_s16 = scalar_lea.hbm %s162_s15, 32  ;;  %p649_p11 = scmp.lt.u32.totalorder %s162_s15, %s1215_s1 }
  0xf0   : > { %p645_p10 = scmp.ne.s32.totalorder %s162_s15, %s644_s16  ;;  %p650_p8 = scmp.lt.u32.totalorder %s874_s9, %s644_s16 }
  0xf1   : > { %p652_p1 = scmp.lt.u32.totalorder %s644_s16, %s162_s15 }
  0xf2   : > { %p646_p12 = pnand %p645_p10, %p409_p9  ;;  %p651_p13 = por %p650_p8, %p649_p11 }
  0xf4   : > { %p647_p6 = pneg %p646_p12  ;;  %p653_p0 = por %p652_p1, %p651_p13 }
  0xf6   : > { %p654_p2 = pnand %p653_p0, %p647_p6 }
  0xf8   : > { %657 = shalt.err (!%p654_p2)  }
  0xf9   : > { %s658_s12 = scalar_lea.vmem %s167_s4, 32  ;;  %p665_p4 = scmp.lt.s32.totalorder %s167_s4, %s886_s17 }
  0xfa   : > { %p659_p5 = scmp.ne.s32.totalorder %s167_s4, %s658_s12  ;;  %p666_p10 = scmp.lt.s32.totalorder %s889_s18, %s658_s12 }
  0xfc   : > { %p660_p3 = pnand %p659_p5, %p409_p9  ;;  %p667_p12 = por %p666_p10, %p665_p4 }
  0xfe   : > { %p661_p7 = pneg %p660_p3 }
 0x100   : > { %p668_p8 = pnand %p667_p12, %p661_p7 }
 0x102   : > { %671 = shalt.err (!%p668_p8)  }
 0x103   : > { %393 = dma.hbm_to_vmem [thread:$0]  (%p409_p9), %s162_s15, 32, %s167_s4, [#allocation2 + $0x7], %s1242_s27, %s1242_s27, %s1244_s19 }
 0x104   : > { %717 = dma.done.wait (%p409_p9), [#allocation2], 32 }
 0x105   : > { %719 = vsyncadd (%p409_p9), [#allocation2], 4294967264 }
 0x106   : > { %721 = dma.done.wait (%p409_p9), [#allocation2 + $0x1], 32 }
 0x107   : > { %723 = vsyncadd (%p409_p9), [#allocation2 + $0x1], 4294967264 }
 0x108   : > { %725 = dma.done.wait (%p409_p9), [#allocation2 + $0x2], 32 }
 0x109   : > { %727 = vsyncadd (%p409_p9), [#allocation2 + $0x2], 4294967264 }
 0x10a   : > { %729 = dma.done.wait (%p409_p9), [#allocation2 + $0x3], 32 }
 0x10b   : > { %731 = vsyncadd (%p409_p9), [#allocation2 + $0x3], 4294967264 }
 0x10c   : > { %733 = dma.done.wait (%p409_p9), [#allocation2 + $0x4], 32 }
 0x10d   : > { %735 = vsyncadd (%p409_p9), [#allocation2 + $0x4], 4294967264 }
 0x10e   : > { %737 = dma.done.wait (%p409_p9), [#allocation2 + $0x5], 32 }
 0x10f   : > { %739 = vsyncadd (%p409_p9), [#allocation2 + $0x5], 4294967264 }
 0x110   : > { %741 = dma.done.wait (%p409_p9), [#allocation2 + $0x6], 32 }
 0x111   : > { %743 = vsyncadd (%p409_p9), [#allocation2 + $0x6], 4294967264 }
 0x112   : > { %745 = dma.done.wait (%p409_p9), [#allocation2 + $0x7], 32 }
 0x113   : > { %747 = vsyncadd (%p409_p9), [#allocation2 + $0x7], 4294967264  ;;  %s1245_s9 = sld [smem:[#allocation33_spill]]  ;;  %s1246_s19 = sld [smem:[#allocation34_spill]] }
 0x114   : > { %s1247_s27 = sld [smem:[#allocation38_spill]]  ;;  %s366_s28 = sshll.u32 %s762_s21, 8 }
 0x115   : > { %s1248_s25 = sld [smem:[#allocation39_spill]]  ;;  %p1249_p6 = scmp.ne.s32.totalorder %s1238_s26, 0 }
 0x117   : > { %p1175_p11 = pnand %p409_p9, %p1249_p6 }
 0x119   : > { %s1250_s14 = scalar_select %p1175_p11, 1, 0 }
 0x11a   : > { %s214_s0 = sand.u32 1, %s1245_s9   ;;  %s1251_s20 = sand.u32 1, %s1246_s19  }
 0x11b   : > { %s200_s2 = scalar_lea.hbm %s1248_s25, %s366_s28  ;;  %s188_s30 = scalar_lea.sflag [#allocation6], %s1251_s20 }
 0x11c   : > { %s672_s7 = scalar_lea.vmem %s1247_s27, 256  ;;  %p674_p0 = pneg %p1175_p11 }
 0x11d   : > { %p673_p1 = scmp.ne.s32.totalorder %s1247_s27, %s672_s7  ;;  %p681_p3 = scmp.lt.s32.totalorder %s889_s18, %s672_s7 }
 0x11e   : > { %p1252_p7 = scmp.lt.s32.totalorder %s1247_s27, %s886_s17 }
 0x11f   : > { %p675_p2 = pnand %p674_p0, %p673_p1 }
 0x120   : > { %p682_p4 = por %p681_p3, %p1252_p7 }
 0x121   : > { %p676_p5 = pneg %p675_p2 }
 0x123   : > { %p683_p10 = pnand %p682_p4, %p676_p5 }
 0x125   : > { %686 = shalt.err (!%p683_p10)
}
 0x126   : > { %s687_s26 = scalar_lea.hbm %s200_s2, 256  ;;  %s692_s24 = scalar_lea.hbm %s1248_s25, 768 }
 0x127   : > { %p688_p9 = scmp.ne.s32.totalorder %s200_s2, %s687_s26  ;;  %p693_p6 = scmp.lt.u32.totalorder %s200_s2, %s1248_s25 }
 0x128   : > { %p694_p13 = scmp.lt.u32.totalorder %s692_s24, %s687_s26  ;;  %p696_p2 = scmp.lt.u32.totalorder %s687_s26, %s200_s2 }
 0x129   : > { %p690_p12 = pnand %p688_p9, %p674_p0 }
 0x12a   : > { %p695_p1 = por %p694_p13, %p693_p6 }
 0x12b   : > { %p691_p8 = pneg %p690_p12 }
 0x12c   : > { %p697_p11 = por %p696_p2, %p695_p1 }
 0x12e   : > { %p698_p3 = pnand %p697_p11, %p691_p8 }
 0x130   : > { %701 = shalt.err (!%p698_p3)
}
 0x131   : > { %p1253_p5 = scmp.ne.s32.totalorder %s1250_s14, 0  ;;  %s1254_s17 = sld [smem:[#allocation37_spill]] }
 0x132   : > { %p1256_p7 = scmp.ge.s32.totalorder %s762_s21, 1  ;;  %s215_s18 = scalar_lea.sflag [#allocation6], %s214_s0 }
 0x133   : > { %404 = dma.vmem_to_hbm [thread:$0]  (!%p1253_p5), %s1247_s27, 256, %s200_s2, %s188_s30  }
 0x137   : > { %p1255_p0 = scmp.ne.s32.totalorder %s1254_s17, 0 }
 0x139   : > { %p406_p4 = pnand %p1256_p7, %p1255_p0 }
 0x13b   : > { %749 = dma.done.wait (!%p406_p4), %s215_s18, 256  }
 0x13c   : > { %751 = vsyncadd (!%p406_p4), %s215_s18, 4294967040  ;;  %s1257_s21 = sld [smem:[#allocation35_spill]]  ;;  %s1258_s20 = sld [smem:[#allocation36_spill]] }
 0x142   : > { %p16_p13 = scmp.ge.s32.totalorder %s1257_s21, 4  }
 0x144   :  { %18 = sbr.rel (!%p16_p13) target bundleno = 15 (0xf), region = 73 }
 0x14b   :  { %220 = vsyncpa [#allocation6], 1 }
 0x14c   :  { %222 = vsyncpa [#allocation6 + $0x1], 1 }
 0x14d   :  { %223 = vsyncmov [#allocation2] }
 0x150   :  { %s224_s29 = vpop.sfrf %223 }
 0x151   :  { %p358_p11 = scmp.ne.s32.totalorder %s224_s29, 0 }
 0x153   :  { %228 = shalt.err (%p358_p11)  }
 0x154   :  { %230 = vsyncmov [#allocation2 + $0x1] }
 0x157   :  { %s231_s13 = vpop.sfrf %230 }
 0x158   :  { %p359_p10 = scmp.ne.s32.totalorder %s231_s13, 0 }
 0x15a   :  { %235 = shalt.err (%p359_p10)  }
 0x15b   :  { %237 = vsyncmov [#allocation2 + $0x2] }
 0x15e   :  { %s238_s10 = vpop.sfrf %237 }
 0x15f   :  { %p360_p9 = scmp.ne.s32.totalorder %s238_s10, 0 }
 0x161   :  { %242 = shalt.err (%p360_p9)  }
 0x162   :  { %244 = vsyncmov [#allocation2 + $0x3] }
 0x165   :  { %s245_s15 = vpop.sfrf %244 }
 0x166   :  { %p361_p12 = scmp.ne.s32.totalorder %s245_s15, 0 }
 0x168   :  { %249 = shalt.err (%p361_p12)  }
 0x169   :  { %251 = vsyncmov [#allocation2 + $0x4] }
 0x16c   :  { %s252_s21 = vpop.sfrf %251 }
 0x16d   :  { %p362_p8 = scmp.ne.s32.totalorder %s252_s21, 0 }
 0x16f   :  { %256 = shalt.err (%p362_p8)  }
 0x170   :  { %258 = vsyncmov [#allocation2 + $0x5] }
 0x173   :  { %s259_s1 = vpop.sfrf %258 }
 0x174   :  { %p363_p6 = scmp.ne.s32.totalorder %s259_s1, 0 }
 0x176   :  { %263 = shalt.err (%p363_p6)  }
 0x177   :  { %265 = vsyncmov [#allocation2 + $0x6] }
 0x17a   :  { %s266_s19 = vpop.sfrf %265 }
 0x17b   :  { %p364_p1 = scmp.ne.s32.totalorder %s266_s19, 0 }
 0x17d   :  { %270 = shalt.err (%p364_p1)  }
 0x17e   :  { %272 = vsyncmov [#allocation2 + $0x7] }
 0x181   :  { %s273_s16 = vpop.sfrf %272 }
 0x182   :  { %p365_p2 = scmp.ne.s32.totalorder %s273_s16, 0 }
 0x184   :  { %277 = shalt.err (%p365_p2)  }

</bundles_post_ra>
